<compile_context>
chip_gen: v7x
topology: tpu7x:2x2x1
jax: 0.10.0
libtpu: 0.0.40
codegen_flags: <defaults>
</compile_context>

<pallas_src>
import math

import jax
import jax.numpy as jnp
from jax import lax
from jax.experimental import pallas as pl
from jax.experimental.pallas import tpu as pltpu


# ---------------------------------------------------------------------------
# Small in-kernel helpers
# ---------------------------------------------------------------------------

def _identity_f32(c):
    """(c, c) identity built from 2-D iotas (Mosaic-friendly)."""
    row = lax.broadcasted_iota(jnp.int32, (c, c), 0)
    col = lax.broadcasted_iota(jnp.int32, (c, c), 1)
    return (row == col).astype(jnp.float32)


def _xxt(x):
    """A[b] = x[b] @ x[b]^T without materializing a transpose."""
    return lax.dot_general(
        x, x, dimension_numbers=(((2,), (2,)), ((0,), (0,))),
        preferred_element_type=jnp.float32)               # (BB, C, C) f32


def _a_w(a, w):
    """M[b] = A[b] @ W  (batched; W broadcast over the batch block)."""
    bb = a.shape[0]
    w_b = jnp.broadcast_to(w, (bb,) + w.shape)            # (BB, C, C) f32
    return lax.dot_general(
        a, w_b, dimension_numbers=(((2,), (1,)), ((0,), (0,))),
        preferred_element_type=jnp.float32)               # (BB, C, C) f32


def _m_x(m, x):
    """o[b] = M[b] @ x[b]."""
    return lax.dot_general(
        m, x, dimension_numbers=(((2,), (1,)), ((0,), (0,))),
        preferred_element_type=jnp.float32)               # (BB, C, TN) f32


# ---------------------------------------------------------------------------
# Kernels
# ---------------------------------------------------------------------------

def _fused_kernel(x_ref, w_ref, o_ref):
    """Single pass: o = ((x x^T) @ (gamma*W_sn) + I) @ x."""
    x = x_ref[...]                                        # (BB, C, Np) native dtype
    a = _xxt(x)                                           # f32
    m = _a_w(a, w_ref[...])                               # f32
    m = m + _identity_f32(m.shape[-1])                    # fold residual
    o = _m_x(m.astype(x.dtype), x)                        # f32 accumulation on MXU
    o_ref[...] = o.astype(o_ref.dtype)


def _build_m_direct_kernel(x_ref, w_ref, m_ref):
    """Phase 1 (f32 M): accumulate A = x x^T straight into the resident M output;
    finalize M = A @ (gamma*W_sn) + I on the last N tile."""
    k = pl.program_id(1)

    @pl.when(k == 0)
    def _():
        m_ref[...] = jnp.zeros_like(m_ref)

    m_ref[...] += _xxt(x_ref[...])

    @pl.when(k == pl.num_programs(1) - 1)
    def _():
        m = _a_w(m_ref[...], w_ref[...])
        m_ref[...] = m + _identity_f32(m.shape[-1])


def _build_m_scratch_kernel(x_ref, w_ref, m_ref, acc_ref):
    """Phase 1 (low-precision M): f32 accumulation in scratch, emit M in x dtype."""
    k = pl.program_id(1)

    @pl.when(k == 0)
    def _():
        acc_ref[...] = jnp.zeros_like(acc_ref)

    acc_ref[...] += _xxt(x_ref[...])

    @pl.when(k == pl.num_programs(1) - 1)
    def _():
        m = _a_w(acc_ref[...], w_ref[...])
        m_ref[...] = (m + _identity_f32(m.shape[-1])).astype(m_ref.dtype)


def _apply_m_kernel(m_ref, x_ref, o_ref):
    """Phase 2: o_tile = M @ x_tile (gamma and residual already folded into M)."""
    x = x_ref[...]                                        # (BB, C, TN)
    o = _m_x(m_ref[...].astype(x.dtype), x)
    o_ref[...] = o.astype(o_ref.dtype)


# ---------------------------------------------------------------------------
# Glue: spectral normalization + tiling heuristics
# ---------------------------------------------------------------------------

def _spectral_normalize(w, n_iter=50):
    """weight / sigma_max via deterministic power iteration.

    TODO(synk): torch.nn.utils.spectral_norm does 1 power iteration per forward
    with a persistent random `u` buffer; this converged deterministic variant
    matches it only in the converged limit."""
    c = w.shape[0]

    def body(carry, _):
        u, _ = carry
        v = w.T @ u
        v = v / (jnp.linalg.norm(v) + 1e-12)
        u = w @ v
        u = u / (jnp.linalg.norm(u) + 1e-12)
        return (u, v), None

    u0 = jnp.ones((c,), w.dtype) / jnp.sqrt(jnp.asarray(c, w.dtype))
    (u, v), _ = jax.lax.scan(body, (u0, jnp.zeros((c,), w.dtype)),
                             None, length=n_iter)
    sigma = u @ (w @ v)
    return w / sigma


def _vmem_capacity_bytes():
    try:
        return int(pltpu.get_tpu_info().vmem_capacity_bytes)
    except Exception:
        return 64 << 20   # conservative fallback = v7x per-TensorCore VMEM


def _pick_batch_block(B, C):
    """Pack several batch elements per grid step when C is small, while keeping
    >= 2 steps along the leading 'parallel' axis when B >= 2 (feeds both v7x TCs)."""
    target = max(1, 128 // max(C, 1))
    target = min(target, B)
    if B >= 2:
        target = max(1, min(target, B // 2))
    for cand in range(target, 0, -1):
        if B % cand == 0:
            return cand
    return 1


def _pick_n_tile(n_pad, C, BB, itemsize, max_tile_bytes):
    """Largest multiple of 128 dividing n_pad with one x tile <= max_tile_bytes."""
    max_tn = max(128, (max_tile_bytes // max(1, BB * C * itemsize)) // 128 * 128)
    t = (min(n_pad, max_tn) // 128) * 128
    t = max(t, 128)
    while t > 128 and n_pad % t != 0:
        t -= 128
    return t


# ---------------------------------------------------------------------------
# Public forward
# ---------------------------------------------------------------------------

def simple_self_attention(x_nchw, conv_weight, gamma, *, sym=False,
                          _force_two_phase=False):
    """x_nchw: (B, C, H, W); conv_weight: (C, C, 1) raw weight; gamma: scalar."""
    B, C, H, W = x_nchw.shape
    N = H * W
    xdt = x_nchw.dtype
    itemsize = jnp.dtype(xdt).itemsize

    # --- parameter preprocessing (plain JAX glue) ---------------------------
    w = conv_weight[:, :, 0].astype(jnp.float32)
    if sym:
        w = (w + w.T) / 2.0
    w_sn = _spectral_normalize(w)                          # (C, C) f32
    # Fold gamma into the weight: gamma*(xxT @ W @ x) == xxT @ (gamma*W) @ x.
    # Keep it f32: the A @ W matmul happens in f32 anyway (A is f32), and this
    # avoids double-rounding the weight path for low-precision inputs.
    w_eff = jnp.asarray(gamma, jnp.float32) * w_sn         # (C, C) f32

    # --- pad N up to a lane-dense multiple of 128 ---------------------------
    n_pad = ((N + 127) // 128) * 128
    x_flat = x_nchw.reshape(B, C, N)
    if n_pad != N:
        x_flat = jnp.pad(x_flat, ((0, 0), (0, 0), (0, n_pad - N)))

    # --- chip-aware budgets --------------------------------------------------
    vmem_cap = _vmem_capacity_bytes()
    vmem_budget = (vmem_cap * 3) // 4            # headroom for Mosaic internal scratch
    small_vmem = vmem_cap <= (64 << 20)          # v7x per-TC
    max_tile_bytes = (2 << 20) if small_vmem else (6 << 20)

    BB = _pick_batch_block(B, C)
    w_bytes = C * C * 4
    m_f32_bytes = BB * C * C * 4
    m_out_bytes = BB * C * C * itemsize
    slab_bytes = BB * C * n_pad * itemsize
    slab_f32_bytes = BB * C * n_pad * 4

    # --- fused single-pass path when the (BB, C, Npad) slab fits VMEM --------
    fused_need = 4 * slab_bytes + slab_f32_bytes + 3 * m_f32_bytes + 2 * w_bytes
    use_fused = (not _force_two_phase) and (fused_need + (4 << 20) <= vmem_budget)

    if use_fused:
        vmem_limit = int(min(max(fused_need + (4 << 20), 32 << 20), vmem_budget))
        out_flat = pl.pallas_call(
            _fused_kernel,
            out_shape=jax.ShapeDtypeStruct((B, C, n_pad), xdt),
            grid_spec=pltpu.PrefetchScalarGridSpec(
                num_scalar_prefetch=0,
                grid=(B // BB,),
                in_specs=[
                    pl.BlockSpec((BB, C, n_pad), lambda b: (b, 0, 0)),   # x slab
                    pl.BlockSpec((C, C), lambda b: (0, 0)),              # gamma*W_sn
                ],
                out_specs=pl.BlockSpec((BB, C, n_pad), lambda b: (b, 0, 0)),
            ),
            compiler_params=pltpu.CompilerParams(
                dimension_semantics=("parallel",),
                vmem_limit_bytes=vmem_limit),
        )(x_flat, w_eff)
    else:
        # --- two-phase streaming path ----------------------------------------
        TN = _pick_n_tile(n_pad, C, BB, itemsize, max_tile_bytes)
        grid = (B // BB, n_pad // TN)
        tile_x = BB * C * TN * itemsize
        need = max(
            2 * tile_x + 2 * m_out_bytes + 2 * w_bytes + 3 * m_f32_bytes,   # phase 1
            2 * m_out_bytes + 4 * tile_x + BB * C * TN * 4,                 # phase 2
        )
        vmem_limit = int(min(max(need + (4 << 20), 32 << 20), vmem_budget))

        m_is_f32 = jnp.dtype(xdt) == jnp.float32
        phase1_kernel = _build_m_direct_kernel if m_is_f32 else _build_m_scratch_kernel
        scratch = [] if m_is_f32 else [pltpu.VMEM((BB, C, C), jnp.float32)]

        # phase 1: M = (x x^T) @ (gamma*W_sn) + I  -- emitted in the input dtype
        m = pl.pallas_call(
            phase1_kernel,
            out_shape=jax.ShapeDtypeStruct((B, C, C), xdt),
            grid_spec=pltpu.PrefetchScalarGridSpec(
                num_scalar_prefetch=0,
                grid=grid,
                in_specs=[
                    pl.BlockSpec((BB, C, TN), lambda b, k: (b, 0, k)),   # x tile
                    pl.BlockSpec((C, C), lambda b, k: (0, 0)),           # gamma*W_sn
                ],
                out_specs=pl.BlockSpec((BB, C, C), lambda b, k: (b, 0, 0)),
                scratch_shapes=scratch,
            ),
            compiler_params=pltpu.CompilerParams(
                dimension_semantics=("parallel", "arbitrary"),
                vmem_limit_bytes=vmem_limit),
        )(x_flat, w_eff)

        # phase 2: o = M @ x  (residual already folded into M)
        out_flat = pl.pallas_call(
            _apply_m_kernel,
            out_shape=jax.ShapeDtypeStruct((B, C, n_pad), xdt),
            grid_spec=pltpu.PrefetchScalarGridSpec(
                num_scalar_prefetch=0,
                grid=grid,
                in_specs=[
                    pl.BlockSpec((BB, C, C), lambda b, k: (b, 0, 0)),    # M
                    pl.BlockSpec((BB, C, TN), lambda b, k: (b, 0, k)),   # x tile
                ],
                out_specs=pl.BlockSpec((BB, C, TN), lambda b, k: (b, 0, k)),
            ),
            compiler_params=pltpu.CompilerParams(
                dimension_semantics=("parallel", "parallel"),
                vmem_limit_bytes=vmem_limit),
        )(m, x_flat)

    if n_pad != N:
        out_flat = out_flat[:, :, :N]
    return out_flat.reshape(B, C, H, W)


# ---------------------------------------------------------------------------
# Pure-JAX reference mirroring the PyTorch forward (same matmul order as torch)
# ---------------------------------------------------------------------------

def _reference(x_nchw, conv_weight, gamma, *, sym=False):
    B, C, H, W = x_nchw.shape
    N = H * W
    w = conv_weight[:, :, 0].astype(jnp.float32)
    if sym:
        w = (w + w.T) / 2.0
    w_sn = _spectral_normalize(w)
    x = x_nchw.reshape(B, C, N).astype(jnp.float32)
    hp = lax.Precision.HIGHEST
    convx = jnp.einsum("oc,bcn->bon", w_sn, x, precision=hp)
    xxT = jnp.einsum("bcn,bdn->bcd", x, x, precision=hp)
    o = jnp.einsum("bcd,bdn->bcn", xxT, convx, precision=hp)
    o = gamma * o + x
    return o.reshape(B, C, H, W).astype(x_nchw.dtype)


if __name__ == "__main__":
    key = jax.random.PRNGKey(0)
    k_x, k_w = jax.random.split(key)

    B, C = 2, 8   # n_in = C = 8
    # Conv1d(n_in, n_in, ks=1, bias=False) weight, kaiming_normal_ init:
    # fan_in = n_in * ks = 8 -> std = sqrt(2 / fan_in)
    std = math.sqrt(2.0 / (C * 1))
    conv_weight = std * jax.random.normal(k_w, (C, C, 1), dtype=jnp.float32)

    # (spatial, gamma, force_two_phase):
    #   16x16 -> N=256 lane-aligned (fused path), gamma=0 init and gamma=0.5
    #   16x16 two-phase forced -> exercises both streaming kernels
    #   14x14 -> N=196 needs zero-padding to 256 (fused path)
    cases = [
        ((16, 16), 0.0, False),
        ((16, 16), 0.5, False),
        ((16, 16), 0.5, True),
        ((14, 14), 0.5, False),
    ]
    for (h, w_sp), gamma, force2 in cases:
        x = jax.random.normal(k_x, (B, C, h, w_sp), dtype=jnp.float32)
        out = jax.block_until_ready(
            simple_self_attention(x, conv_weight, gamma, sym=False,
                                  _force_two_phase=force2))
        ref = _reference(x, conv_weight, gamma, sym=False)
        assert out.shape == x.shape, (out.shape, x.shape)
        err = float(jnp.max(jnp.abs(out.astype(jnp.float32)
                                    - ref.astype(jnp.float32))))
        scale = float(jnp.max(jnp.abs(ref.astype(jnp.float32)))) + 1e-6
        assert err <= 2e-2 * scale + 1e-3, ((h, w_sp), gamma, force2, err, scale)

    print("KERNEL_OK")
</pallas_src>

<mosaic_0001>
module attributes {stable_mosaic.version = 11 : i64} {
  func.func @_fused_kernel(%arg0: i32, %arg1: memref<1x8x256xf32, #tpu.memory_space<vmem>>, %arg2: memref<8x8xf32, #tpu.memory_space<vmem>>, %arg3: memref<1x8x256xf32, #tpu.memory_space<vmem>>) attributes {dimension_semantics = [#tpu.dimension_semantics<parallel>], iteration_bounds = array<i64: 2>, scalar_prefetch = 0 : i64, scratch_operands = 0 : i64, tpu.core_type = #tpu.core_type<tc>, window_params = [{transform_indices = @transform_0, window_bounds = array<i64: 1, 8, 256>}, {pipeline_mode = #tpu.pipeline_mode<synchronous>, transform_indices = @transform_1, window_bounds = array<i64: 8, 8>}, {transform_indices = @transform_2, window_bounds = array<i64: 1, 8, 256>}]} {
    %c0 = arith.constant 0 : index
    %c0_0 = arith.constant 0 : index
    %c0_1 = arith.constant 0 : index
    %0 = vector.load %arg1[%c0, %c0_0, %c0_1] : memref<1x8x256xf32, #tpu.memory_space<vmem>>, vector<1x8x256xf32>
    %cst = arith.constant dense<0.000000e+00> : vector<1x8x8xf32>
    %1 = tpu.matmul %0, %0, %cst {dimension_numbers = #tpu.dot_dimension_numbers<[2], [2], [1], [1], [0, 0, 0, 1, 1, 1], [0], [0]>} : vector<1x8x256xf32>, vector<1x8x256xf32>, vector<1x8x8xf32> -> vector<1x8x8xf32>
    %c0_2 = arith.constant 0 : index
    %c0_3 = arith.constant 0 : index
    %2 = vector.load %arg2[%c0_2, %c0_3] : memref<8x8xf32, #tpu.memory_space<vmem>>, vector<8x8xf32>
    %3 = vector.shape_cast %2 : vector<8x8xf32> to vector<1x8x8xf32>
    %cst_4 = arith.constant dense<0.000000e+00> : vector<1x8x8xf32>
    %4 = tpu.matmul %1, %3, %cst_4 {dimension_numbers = #tpu.dot_dimension_numbers<[2], [1], [1], [2], [0, 0, 0, 1, 1, 2], [0], [0]>} : vector<1x8x8xf32>, vector<1x8x8xf32>, vector<1x8x8xf32> -> vector<1x8x8xf32>
    %5 = tpu.iota {dimensions = array<i32: 0>} : vector<8x8xi32>
    %6 = tpu.iota {dimensions = array<i32: 1>} : vector<8x8xi32>
    %7 = arith.cmpi eq, %5, %6 : vector<8x8xi32>
    %8 = arith.extui %7 : vector<8x8xi1> to vector<8x8xi32>
    %9 = arith.sitofp %8 : vector<8x8xi32> to vector<8x8xf32>
    %10 = vector.shape_cast %9 : vector<8x8xf32> to vector<1x8x8xf32>
    %11 = arith.addf %4, %10 : vector<1x8x8xf32>
    %cst_5 = arith.constant dense<0.000000e+00> : vector<1x8x256xf32>
    %12 = tpu.matmul %11, %0, %cst_5 {dimension_numbers = #tpu.dot_dimension_numbers<[2], [1], [1], [2], [0, 0, 0, 1, 1, 2], [0], [0]>} : vector<1x8x8xf32>, vector<1x8x256xf32>, vector<1x8x256xf32> -> vector<1x8x256xf32>
    %c0_6 = arith.constant 0 : index
    %c0_7 = arith.constant 0 : index
    %c0_8 = arith.constant 0 : index
    %13 = vector.load %arg3[%c0_6, %c0_7, %c0_8] : memref<1x8x256xf32, #tpu.memory_space<vmem>>, vector<1x8x256xf32>
    tpu.vector_store %arg3[%c0_6, %c0_7, %c0_8], %12 {strides = array<i32>} : memref<1x8x256xf32, #tpu.memory_space<vmem>>, vector<1x8x256xf32>,
    return
  }
  func.func @transform_0(%arg0: i32) -> (i32, i32, i32) {
    %c0_i32 = arith.constant 0 : i32
    %c0_i32_0 = arith.constant 0 : i32
    %c0_i32_1 = arith.constant 0 : i32
    return %arg0, %c0_i32, %c0_i32_0 : i32, i32, i32
  }
  func.func @transform_1(%arg0: i32) -> (i32, i32) {
    %c0_i32 = arith.constant 0 : i32
    %c0_i32_0 = arith.constant 0 : i32
    %c0_i32_1 = arith.constant 0 : i32
    return %c0_i32, %c0_i32_0 : i32, i32
  }
  func.func @transform_2(%arg0: i32) -> (i32, i32, i32) {
    %c0_i32 = arith.constant 0 : i32
    %c0_i32_0 = arith.constant 0 : i32
    %c0_i32_1 = arith.constant 0 : i32
    return %arg0, %c0_i32, %c0_i32_0 : i32, i32, i32
  }
}

</mosaic_0001>

<bundles_post_ra>
// kernel: tpu_custom_call.1
= control target key start
LH: loop header
LB: loop body
LE: loop exit
PB: predicated region body
PF: predicated region fallthrough
CT: control target
= control target key end

     0   :  { %7 = vsyncpa [#allocation3], 0  ;;  %s940_s0 = inlined_call_operand.hbm [shape: f32[2,8,256], index: 0, kind: input, shape index: {}]   ;;  %s941_s1 = inlined_call_operand.hbm [shape: f32[8,8], index: 1, kind: input, shape index: {}]   ;;  %s942_s2 = inlined_call_operand.hbm [shape: f32[2,8,256], index: 2, kind: output, shape index: {}]  }
   0x1   :  { %9 = vsyncpa [#allocation3 + $0x1], 0 }
   0x2   :  { %10 = vsyncpa [#allocation6], 0 }
   0x3   :  { %11 = vsyncpa [#allocation4], 0 }
   0x4   :  { %13 = vsyncpa [#allocation4 + $0x1], 0  ;;  %s735_s9 = smov 0   ;;  %s737_s10 = smov 0  }
   0x5   :  { %s739_s11 = smov 0   ;;  %s741_s12 = smov 0  }
   0x6 LB: > { %s756_s13 = sadd.s32 4294967295, %s713_s12   ;;  %s498_s14 = sadd.s32 4294967294, %s713_s12   ;;  %s713_s12 = sphi %s741_s12, %s966_s12   ;;  %s709_s11 = sphi %s739_s11, %s965_s11   ;;  %s705_s10 = sphi %s737_s10, %s964_s10   ;;  %s701_s9 = sphi %s735_s9, %s963_s9  }
   0x7   : > { %p39_p0 = scmp.ne.s32.totalorder %s705_s10, %s701_s9  ;;  %p943_p1 = scmp.eq.s32.totalorder %s756_s13, 0 }
   0x8   : > { %p90_p3 = scmp.eq.s32.totalorder %s498_s14, 1  ;;  %p499_p5 = scmp.ge.s32.totalorder %s713_s12, 1 }
   0x9   : > { %p765_p4 = por %p943_p1, %p39_p0  ;;  %p97_p7 = scmp.lt.s32.totalorder %s713_s12, 3 }
   0xa   : > { %p770_p6 = por %p90_p3, %p39_p0  ;;  %s715_s18 = smov [#allocation5]  }
   0xb   : > { %s946_s15 = scalar_select %p765_p4, 1, 0 }
   0xc   : > { %s947_s16 = scalar_select %p770_p6, 1, 0 }
   0xd   : > { %p775_p8 = pnand %p499_p5, %p97_p7  ;;  %s110_s19 = sshll.u32 %s715_s18, 4  ;;  %s111_s19 = int_to_ptr.vmem [resolvable:$true] %s110_s19 }
   0xe   : > { %s783_s20 = sadd.s32 1, %s713_s12   ;;  %s26_s24 = sadd.s32 1, %s709_s11 }
   0xf   : > { %s948_s17 = scalar_select %p775_p8, 1, 0 }
  0x10   : > { %p534_p10 = pneg %p775_p8  ;;  %s23_s22 = ssub.s32 %s713_s12, %s783_s20 }
  0x11   : > { %p793_p12 = scmp.eq.s32.totalorder %s23_s22, 0  ;;  %s585_s27 = scalar_lea.hbm %s941_s1, 128 }
  0x12   : > { %p787_p11 = pnand %p534_p10, %p943_p1  ;;  %p586_p0 = scmp.ne.s32.totalorder %s941_s1, %s585_s27 }
  0x13   : > { %s950_s23 = scalar_select %p793_p12, 1, 0 }
  0x14   : > { %p587_p3 = pneg %p787_p11  ;;  %p592_p10 = scmp.lt.u32.totalorder %s585_s27, %s941_s1 }
  0x16   : > { %p588_p5 = pnand %p587_p3, %p586_p0 }
  0x18   : > { %p589_p7 = pneg %p588_p5 }
  0x1a   : > { %p594_p9 = pnand %p592_p10, %p589_p7 }
  0x1c   : > { %597 = shalt.err (!%p594_p9)
}
  0x1d   : > { %s598_s4 = scalar_lea.vmem %s111_s19, 128  ;;  %p606_p6 = scmp.lt.s32.totalorder %s111_s19, %s111_s19 }
  0x1e   : > { %p599_p1 = scmp.ne.s32.totalorder %s111_s19, %s598_s4  ;;  %p607_p4 = scmp.lt.s32.totalorder %s598_s4, %s598_s4 }
  0x20   : > { %p601_p2 = pnand %p599_p1, %p587_p3  ;;  %p608_p8 = por %p607_p4, %p606_p6 }
  0x22   : > { %p602_p13 = pneg %p601_p2 }
  0x24   : > { %p609_p12 = pnand %p608_p8, %p602_p13 }
  0x26   : > { %612 = shalt.err (!%p609_p12)
}
  0x27   : > { %537 = dma.hbm_to_vmem [thread:$0]  (!%p787_p11), %s941_s1, 128, %s111_s19, [#allocation6]  }
  0x28   : > { %p951_p1 = scmp.ne.s32.totalorder %s950_s23, 0  ;;  %p34_p2 = scmp.eq.s32.totalorder %s713_s12, 0 }
  0x29   : > { %p952_p4 = scmp.ne.s32.totalorder %s709_s11, %s705_s10  ;;  %p953_p6 = scmp.eq.s32.totalorder %s756_s13, 1 }
  0x2a   : > { %s819_s7 = scalar_select %p951_p1, %s709_s11, %s26_s24  }
  0x2b   : > { %p827_p8 = por %p953_p6, %p952_p4  ;;  %p547_p9 = scmp.lt.s32.totalorder %s713_s12, 2 }
  0x2c   : > { %s121_s14 = sand.u32 1, %s709_s11   ;;  %p955_p12 = pmov %p952_p4 }
  0x2d   : > { %s502_s18 = sshll.u32 %s121_s14, 4  ;;  %s517_s21 = sshll.u32 %s713_s12, 8 }
  0x2e   : > { %p35_p13 = por %p34_p2, %p955_p12  ;;  %s840_s19 = scalar_lea.hbm %s940_s0, %s517_s21 }
  0x2f   : > { %s125_s23 = scalar_lea.vmem [#allocation2], %s502_s18  ;;  %s122_s27 = scalar_lea.sflag [#allocation3], %s121_s14 }
  0x30   : > { %s133_s24 = sshll.u32 %s125_s23, 4  ;;  %p842_p11 = pnand %p547_p9, %p35_p13  ;;  %s846_s24 = int_to_ptr.vmem [resolvable:$true] %s133_s24 }
  0x31   : > { %s613_s28 = scalar_lea.hbm %s840_s19, 256  ;;  %s618_s3 = scalar_lea.hbm %s940_s0, 512 }
  0x32   : > { %p614_p0 = scmp.ne.s32.totalorder %s840_s19, %s613_s28  ;;  %p615_p3 = pneg %p842_p11 }
  0x33   : > { %p619_p10 = scmp.lt.u32.totalorder %s840_s19, %s940_s0  ;;  %p620_p1 = scmp.lt.u32.totalorder %s618_s3, %s613_s28 }
  0x34   : > { %p616_p5 = pnand %p615_p3, %p614_p0  ;;  %p622_p4 = scmp.lt.u32.totalorder %s613_s28, %s840_s19 }
  0x35   : > { %p621_p2 = por %p620_p1, %p619_p10 }
  0x36   : > { %p617_p7 = pneg %p616_p5 }
  0x37   : > { %p623_p6 = por %p622_p4, %p621_p2 }
  0x39   : > { %p624_p9 = pnand %p623_p6, %p617_p7 }
  0x3b   : > { %627 = shalt.err (!%p624_p9)
}
  0x3c   : > { %s628_s6 = scalar_lea.vmem %s846_s24, 256  ;;  %s716_s14 = smov [#allocation2]  }
  0x3d   : > { %p629_p12 = scmp.ne.s32.totalorder %s846_s24, %s628_s6  ;;  %s633_s18 = sshll.u32 %s716_s14, 4  ;;  %s634_s18 = int_to_ptr.vmem [resolvable:$false] %s633_s18 }
  0x3e   : > { %s635_s21 = scalar_lea.vmem %s634_s18, 512  ;;  %p636_p5 = scmp.lt.s32.totalorder %s846_s24, %s634_s18 }
  0x3f   : > { %p631_p13 = pnand %p629_p12, %p615_p3  ;;  %p637_p10 = scmp.lt.s32.totalorder %s635_s21, %s628_s6 }
  0x41   : > { %p632_p0 = pneg %p631_p13  ;;  %p638_p1 = por %p637_p10, %p636_p5 }
  0x43   : > { %p639_p2 = pnand %p638_p1, %p632_p0 }
  0x45   : > { %642 = shalt.err (!%p639_p2)
}
  0x46   : > { %541 = dma.hbm_to_vmem [thread:$0]  (!%p842_p11), %s840_s19, 256, %s846_s24, %s122_s27  }
  0x47   : > { %p957_p7 = scmp.ne.s32.totalorder %s948_s17, 0 }
  0x48   : > { %s876_s22 = sand.u32 (!%p957_p7), 1, %s705_s10   ;;  %p958_p3 = scmp.ne.s32.totalorder (!%p957_p7), %s946_s15, 0 }
  0x49   : > { %142 = sbr.rel (%p957_p7) target bundleno = 742 (0x2e6), region = 28  ;;  %s506_s25 = sshll.u32 (!%p957_p7), %s876_s22, 4 }
  0x4a   : > { %s145_s23 = scalar_lea.sflag (!%p957_p7), [#allocation3], %s876_s22  ;;  %s148_s28 = scalar_lea.vmem (!%p957_p7), [#allocation2], %s506_s25 }
  0x50   : > { %688 = dma.done.wait (%p958_p3), %s145_s23, 256  }
  0x51   : > { %690 = vsyncadd (%p958_p3), %s145_s23, 4294967040  ;;  %p959_p11 = scmp.eq.s32.totalorder %s756_s13, 0 }
  0x53   : > { %692 = dma.done.wait (%p959_p11), [#allocation6], 128   ;;  %p960_p4 = pmov %p959_p11 }
  0x54   : > { %v717_v0 = vmov 0.0   ;;  %v174_v1 = vld [vmem:[%s148_s28 + $0x8] sm:$0xff]  ;;  %v173_v2 = vld [vmem:[%s148_s28] sm:$0xff]  ;;  %vm718_vm0 = vmmov 0   ;;  %vm253_vm1 = vcmask 64512   ;;  %v246_v6 = vlaneseq  ;;  %s172_s15 = scalar_lea.vmem [#allocation7], %s506_s25 }
  0x55   : > { %694 = vsyncadd (%p960_p4), [#allocation6], 4294967168  ;;  %521 = vmatprep.subr.mxu1 %v717_v0  ;;  %175 = vmatprep.subr.mxu0 %v174_v1  ;;  %v245_v3 = vld [vmem:[#allocation5] sm:$0xff]  ;;  %s418_s17 = sshll.u32 %s172_s15, 4  ;;  %s518_s19 = sshll.u32 %s756_s13, 8  ;;  %s893_s17 = int_to_ptr.vmem [resolvable:$true] %s418_s17 }
  0x56   : > { %239 = vmatprep.mubr.f32.mxu0 %v174_v1  ;;  %176 = vmatpush1.xpose.msra.mxu0 %v173_v2  ;;  %v247_v7 = vshrl.u32 %v246_v6, 7  ;;  %v249_v8 = vand.u32 127, %v246_v6  ;;  %s898_s27 = scalar_lea.hbm %s942_s2, %s518_s19  ;;  %s404_s29 = scalar_lea.sflag [#allocation4], %s876_s22 }
  0x57   : > { %522 = vmatpush3.msra.mxu1 %v245_v3  ;;  %523 = vmatprep.mubr.msk.f32.mxu1 %vm718_vm0, %v717_v0  ;;  %s643_s30 = scalar_lea.vmem %s893_s17, 256  ;;  %s719_s13 = smov [#allocation7]  }
  0x58   : > { %330 = vmatprep.subr.mxu1 %v174_v1  ;;  %vm250_vm2 = vcmp.eq.s32.totalorder %v247_v7, %v249_v8  ;;  %p644_p6 = scmp.ne.s32.totalorder %s893_s17, %s643_s30  ;;  %s647_s3 = sshll.u32 %s719_s13, 4  ;;  %s648_s3 = int_to_ptr.vmem [resolvable:$false] %s647_s3 }
  0x59   : > { %240 = vmatmul.mubr.f32.vlgmr.msra.gmra.mrb[0].mxu0 %v173_v2  ;;  %v509_v9 = vsel %vm250_vm2, 1.0, %v717_v0  ;;  %s649_s4 = scalar_lea.vmem %s648_s3, 512  ;;  %p650_p13 = scmp.lt.s32.totalorder %s893_s17, %s648_s3 }
  0x5a   : > { %p645_p9 = pnand %p644_p6, %p827_p8  ;;  %p651_p0 = scmp.lt.s32.totalorder %s649_s4, %s643_s30 }
  0x5c   : > { %p646_p12 = pneg %p645_p9  ;;  %p652_p5 = por %p651_p0, %p650_p13 }
  0x5e   : > { %p653_p10 = pnand %p652_p5, %p646_p12 }
 0x12c   : > { %v241_v4 = vpop.f32.mrb[0].mxu0 }
 0x12d   : > { %v243_v5 = vpop.f32.mrb[1].mxu0  ;;  %524 = vmatmul.mubr.msk.f32.vlgmr.msra.gmra.mrb[0].mxu1 %vm253_vm1, %v241_v4 }
 0x12e   : > { %331 = vmatpush1.msra.mxu1 %v173_v2  ;;  %394 = vmatprep.mubr.f32.mxu1 %v717_v0 }
 0x200   : > { %v323_v10 = vpop.f32.mrb[0].mxu1 }
 0x201   : > { %v324_v11 = vadd.f32 %v509_v9, %v323_v10  ;;  %v525_v12 = vpop.f32.mrb[1].mxu1 }
 0x203   : > { %511 = vmatmul.mubr.msk.f32.vlgmr.msra.gmra.mrb[2].mxu1 %vm253_vm1, %v324_v11 }
 0x2d6   : > { %v396_v13 = vpop.f32.mrb[2].mxu1 }
 0x2d7   : > { %401 = vst [vmem:[%s172_s15] sm:$0xff] %v396_v13  ;;  %v398_v14 = vpop.f32.mrb[3].mxu1 }
 0x2d8   : > { %402 = vst [vmem:[%s172_s15 + $0x8] sm:$0xff] %v398_v14 }
 0x2d9   : > { %656 = shalt.err (!%p653_p10)
}
 0x2da   : > { %s657_s5 = scalar_lea.hbm %s898_s27, 256  ;;  %s661_s18 = scalar_lea.hbm %s942_s2, 512 }
 0x2db   : > { %p658_p1 = scmp.ne.s32.totalorder %s898_s27, %s657_s5  ;;  %p662_p3 = scmp.lt.u32.totalorder %s898_s27, %s942_s2 }
 0x2dc   : > { %p663_p11 = scmp.lt.u32.totalorder %s661_s18, %s657_s5  ;;  %p665_p6 = scmp.lt.u32.totalorder %s657_s5, %s898_s27 }
 0x2dd   : > { %p659_p2 = pnand %p658_p1, %p827_p8 }
 0x2de   : > { %p664_p4 = por %p663_p11, %p662_p3 }
 0x2df   : > { %p660_p7 = pneg %p659_p2 }
 0x2e0   : > { %p666_p9 = por %p665_p6, %p664_p4 }
 0x2e2   : > { %p667_p12 = pnand %p666_p9, %p660_p7 }
 0x2e4   : > { %670 = shalt.err (!%p667_p12)
}
 0x2e5   : > { %532 = dma.vmem_to_hbm [thread:$0]  (%p827_p8), %s893_s17, 256, %s898_s27, %s404_s29  }
 0x2e6 PF: > { %s430_s25 = sand.u32 1, %s701_s9   ;;  %p961_p13 = scmp.ne.s32.totalorder %s947_s16, 0 }
 0x2e7   : > { %p962_p0 = scmp.ge.s32.totalorder %s713_s12, 2  ;;  %s431_s23 = scalar_lea.sflag [#allocation4], %s430_s25 }
 0x2e9   : > { %p543_p5 = pnand %p962_p0, %p961_p13 }
 0x2eb   : > { %696 = dma.done.wait (!%p543_p5), %s431_s23, 256  }
 0x2ec   : > { %698 = vsyncadd (!%p543_p5), %s431_s23, 4294967040  ;;  %p16_p10 = scmp.ge.s32.totalorder %s783_s20, 4   ;;  %s963_s9 = smov %s705_s10 }
 0x2ed   : > { %s964_s10 = smov %s709_s11  ;;  %s965_s11 = smov %s819_s7 }
 0x2ee   : > { %s966_s12 = smov %s783_s20  ;;  %18 = sbr.rel (!%p16_p10) target bundleno = 6 (0x6), region = 77 }
 0x2f5   :  { %436 = vsyncpa [#allocation3], 1 }
 0x2f6   :  { %438 = vsyncpa [#allocation3 + $0x1], 1 }
 0x2f7   :  { %439 = vsyncpa [#allocation6], 1 }
 0x2f8   :  { %440 = vsyncpa [#allocation4], 1 }
 0x2f9   :  { %442 = vsyncpa [#allocation4 + $0x1], 1 }

</bundles_post_ra>
